<compile_context>
chip_gen: v5e
topology: v5e:2x2
jax: 0.10.0
libtpu: 0.0.40
codegen_flags: <defaults>
</compile_context>

<pallas_src>
import math
import jax
import jax.numpy as jnp
from jax.experimental import pallas as pl
from jax.experimental.pallas import tpu as pltpu

DECODER_DIM = 512


def _attention_kernel(
    img_ref,    # (BT, P, E)  VMEM
    uh_ref,     # (BT, D)     VMEM  -- U(hidden_state), precomputed in wrapper
    Wt_ref,     # (E, D)      VMEM  -- W.weight^T
    Wb_ref,     # (1, D)      VMEM  -- W.bias
    vt_ref,     # (1, D)      VMEM  -- v.weight (row vector)
    vb_ref,     # (1,)        SMEM  -- v.bias (scalar)
    wout_ref,   # (BT, E)     weighted img features
    alpha_ref,  # (BT, P)     attention weights (lane-dense)
):
    BT, P, E = img_ref.shape
    img = img_ref[...]                                      # (BT, P, E)

    # W_s = W(img_features): one MXU matmul with M = BT*P for the whole tile.
    w_s = jnp.dot(img.reshape(BT * P, E), Wt_ref[...],
                  preferred_element_type=jnp.float32) + Wb_ref[...]
    w_s = w_s.reshape(BT, P, w_s.shape[-1])                 # (BT, P, D)

    # att = tanh(U_h + W_s), broadcasting U_h over the pixel axis.
    att = jnp.tanh(uh_ref[...][:, None, :] + w_s)           # (BT, P, D)

    # e = v(att): contract over D (lane axis) -> (BT, P), already lane-dense.
    e = jnp.sum(att * vt_ref[...], axis=-1) + vb_ref[0]     # (BT, P)

    # Softmax over pixels (last axis).
    m = jnp.max(e, axis=-1, keepdims=True)
    p = jnp.exp(e - m)
    denom = jnp.sum(p, axis=-1, keepdims=True)
    # Exact reciprocal keeps alpha within 1e-5 of the f32 reference;
    # pl.reciprocal(denom, approx=True) would move this onto the free EUP slot.
    alpha = p * pl.reciprocal(denom)                        # (BT, P)

    # weighted = sum_p alpha_p * img_p as an MXU batched contraction over P.
    weighted = jnp.einsum("bqp,bpe->bqe", alpha[:, None, :], img,
                          preferred_element_type=jnp.float32)   # (BT, 1, E)

    wout_ref[...] = weighted[:, 0, :]
    alpha_ref[...] = alpha


def attention_forward(img_features, hidden_state, params, batch_tile=None):
    """img_features: (B, P, E) f32, hidden_state: (B, 512) f32."""
    B, P, E = img_features.shape
    D = hidden_state.shape[-1]
    Ut, Ub, Wt, Wb, vt, vb = params

    # Hoisted U_h = U(hidden_state): tiny (B,D)x(D,D) matmul done once in XLA;
    # drops the 1 MiB U weight (and its DMA) from the kernel entirely.
    u_h = hidden_state @ Ut + Ub                             # (B, D)

    # Batch tiling: whole batch in one grid step when small; tiles of 8 rows
    # (sublane multiple) for large B so the grid keeps a "parallel" axis for
    # megacore sharding on v7x.
    if batch_tile is None:
        batch_tile = 8 if (B > 8 and B % 8 == 0) else B
    BT = batch_tile
    assert B % BT == 0 and (BT == B or BT % 8 == 0), (B, BT)
    grid = (B // BT,)

    weighted, alpha = pl.pallas_call(
        _attention_kernel,
        out_shape=(
            jax.ShapeDtypeStruct((B, E), jnp.float32),
            jax.ShapeDtypeStruct((B, P), jnp.float32),
        ),
        grid_spec=pltpu.PrefetchScalarGridSpec(
            num_scalar_prefetch=0,
            grid=grid,
            in_specs=[
                pl.BlockSpec((BT, P, E), lambda b: (b, 0, 0)),      # img tile
                pl.BlockSpec((BT, D), lambda b: (b, 0)),            # U_h tile
                pl.BlockSpec((E, D), lambda b: (0, 0)),             # W^T (resident)
                pl.BlockSpec((1, D), lambda b: (0, 0)),             # W bias
                pl.BlockSpec((1, D), lambda b: (0, 0)),             # v weight row
                pl.BlockSpec(memory_space=pltpu.MemorySpace.SMEM),  # v bias scalar
            ],
            out_specs=[
                pl.BlockSpec((BT, E), lambda b: (b, 0)),    # weighted (lane-dense)
                pl.BlockSpec((BT, P), lambda b: (b, 0)),    # alpha (lane-dense)
            ],
        ),
        compiler_params=pltpu.CompilerParams(
            dimension_semantics=("parallel",),
        ),
    )(img_features, u_h, Wt, Wb, vt, vb)

    return weighted, alpha


def init_params(key, encoder_dim):
    """Deterministic nn.Linear-style init (uniform +/- 1/sqrt(fan_in))."""
    D = DECODER_DIM
    kU_w, kU_b, kW_w, kW_b, kv_w, kv_b = jax.random.split(key, 6)

    def lin(kw, kb, fan_in, fan_out):
        bound = 1.0 / math.sqrt(fan_in)
        w = jax.random.uniform(kw, (fan_out, fan_in), jnp.float32, -bound, bound)
        b = jax.random.uniform(kb, (fan_out,), jnp.float32, -bound, bound)
        return w, b

    U_w, U_b = lin(kU_w, kU_b, D, D)
    W_w, W_b = lin(kW_w, kW_b, encoder_dim, D)
    v_w, v_b = lin(kv_w, kv_b, D, 1)

    # Pre-transpose weights to (in, out) layout for plain row-major matmuls.
    Ut = U_w.T                     # (D, D)
    Ub = U_b.reshape(1, D)
    Wt = W_w.T                     # (E, D)
    Wb = W_b.reshape(1, D)
    vt = v_w.reshape(1, D)         # v row vector
    vb = v_b.reshape(1)            # scalar bias, lives in SMEM inside the kernel
    return Ut, Ub, Wt, Wb, vt, vb


def attention_reference(img_features, hidden_state, params):
    """Pure-JAX reference mirroring the PyTorch forward."""
    Ut, Ub, Wt, Wb, vt, vb = params
    U_h = hidden_state @ Ut + Ub                          # (B, 512)
    W_s = img_features @ Wt + Wb                          # (B, P, 512)
    att = jnp.tanh(U_h[:, None, :] + W_s)                 # (B, P, 512)
    e = jnp.sum(att * vt[None], axis=-1) + vb[0]          # (B, P)
    alpha = jax.nn.softmax(e, axis=1)                     # (B, P)
    weighted = jnp.sum(img_features * alpha[:, :, None], axis=1)  # (B, E)
    return weighted, alpha


if __name__ == "__main__":
    key = jax.random.PRNGKey(0)
    k_img, k_hid, k_par = jax.random.split(key, 3)

    B, P, E = 2, 16, 128   # beam_size, feature_pixels, encoder_dim (small synthetic)
    img_features = jax.random.normal(k_img, (B, P, E), jnp.float32)
    hidden_state = jax.random.normal(k_hid, (B, DECODER_DIM), jnp.float32)
    params = init_params(k_par, E)

    weighted, alpha = attention_forward(img_features, hidden_state, params)
    jax.block_until_ready((weighted, alpha))

    w_ref, a_ref = attention_reference(img_features, hidden_state, params)
    assert weighted.shape == (B, E) and alpha.shape == (B, P)
    # weighted goes through an MXU contraction in-kernel (may use bf16
    # multiplier passes at default matmul precision) -> slightly looser bound.
    assert jnp.allclose(weighted, w_ref, atol=1e-3, rtol=1e-3)
    assert jnp.allclose(alpha, a_ref, atol=1e-5, rtol=1e-5)

    print("KERNEL_OK")
</pallas_src>

<mosaic_0001>
module attributes {stable_mosaic.version = 11 : i64} {
  func.func @_attention_kernel(%arg0: i32, %arg1: memref<2x16x128xf32, #tpu.memory_space<vmem>>, %arg2: memref<2x512xf32, #tpu.memory_space<vmem>>, %arg3: memref<128x512xf32, #tpu.memory_space<vmem>>, %arg4: memref<1x512xf32, #tpu.memory_space<vmem>>, %arg5: memref<1x512xf32, #tpu.memory_space<vmem>>, %arg6: memref<1xf32, #tpu.memory_space<smem>>, %arg7: memref<2x128xf32, #tpu.memory_space<vmem>>, %arg8: memref<2x16xf32, #tpu.memory_space<vmem>>) attributes {dimension_semantics = [#tpu.dimension_semantics<parallel>], iteration_bounds = array<i64: 1>, scalar_prefetch = 0 : i64, scratch_operands = 0 : i64, tpu.core_type = #tpu.core_type<tc>, window_params = [{transform_indices = @transform_0, window_bounds = array<i64: 2, 16, 128>}, {transform_indices = @transform_1, window_bounds = array<i64: 2, 512>}, {pipeline_mode = #tpu.pipeline_mode<synchronous>, transform_indices = @transform_2, window_bounds = array<i64: 128, 512>}, {pipeline_mode = #tpu.pipeline_mode<synchronous>, transform_indices = @transform_3, window_bounds = array<i64: 1, 512>}, {pipeline_mode = #tpu.pipeline_mode<synchronous>, transform_indices = @transform_4, window_bounds = array<i64: 1, 512>}, {transform_indices = @transform_5, window_bounds = array<i64: 1>}, {transform_indices = @transform_6, window_bounds = array<i64: 2, 128>}, {transform_indices = @transform_7, window_bounds = array<i64: 2, 16>}]} {
    %c0 = arith.constant 0 : index
    %c0_0 = arith.constant 0 : index
    %c0_1 = arith.constant 0 : index
    %0 = vector.load %arg1[%c0, %c0_0, %c0_1] : memref<2x16x128xf32, #tpu.memory_space<vmem>>, vector<2x16x128xf32>
    %1 = vector.shape_cast %0 : vector<2x16x128xf32> to vector<32x128xf32>
    %c0_2 = arith.constant 0 : index
    %c0_3 = arith.constant 0 : index
    %2 = vector.load %arg3[%c0_2, %c0_3] : memref<128x512xf32, #tpu.memory_space<vmem>>, vector<128x512xf32>
    %cst = arith.constant dense<0.000000e+00> : vector<32x512xf32>
    %3 = tpu.matmul %1, %2, %cst {dimension_numbers = #tpu.dot_dimension_numbers<[1], [0], [0], [1], [0, 0, 1, 1], [], []>} : vector<32x128xf32>, vector<128x512xf32>, vector<32x512xf32> -> vector<32x512xf32>
    %c0_4 = arith.constant 0 : index
    %c0_5 = arith.constant 0 : index
    %4 = vector.load %arg4[%c0_4, %c0_5] : memref<1x512xf32, #tpu.memory_space<vmem>>, vector<1x512xf32>
    %5 = vector.broadcast %4 : vector<1x512xf32> to vector<32x512xf32>
    %6 = arith.addf %3, %5 : vector<32x512xf32>
    %7 = vector.shape_cast %6 : vector<32x512xf32> to vector<2x16x512xf32>
    %c0_6 = arith.constant 0 : index
    %c0_7 = arith.constant 0 : index
    %8 = vector.load %arg2[%c0_6, %c0_7] : memref<2x512xf32, #tpu.memory_space<vmem>>, vector<2x512xf32>
    %9 = vector.shape_cast %8 : vector<2x512xf32> to vector<2x1x512xf32>
    %10 = vector.broadcast %9 : vector<2x1x512xf32> to vector<2x16x512xf32>
    %11 = arith.addf %10, %7 : vector<2x16x512xf32>
    %12 = math.tanh %11 : vector<2x16x512xf32>
    %c0_8 = arith.constant 0 : index
    %c0_9 = arith.constant 0 : index
    %13 = vector.load %arg5[%c0_8, %c0_9] : memref<1x512xf32, #tpu.memory_space<vmem>>, vector<1x512xf32>
    %14 = vector.shape_cast %13 : vector<1x512xf32> to vector<1x1x512xf32>
    %15 = vector.broadcast %14 : vector<1x1x512xf32> to vector<2x16x512xf32>
    %16 = arith.mulf %12, %15 : vector<2x16x512xf32>
    %cst_10 = arith.constant dense<0.000000e+00> : vector<2x16xf32>
    %17 = vector.multi_reduction <add>, %16, %cst_10 [2] : vector<2x16x512xf32> to vector<2x16xf32>
    %c0_11 = arith.constant 0 : index
    %18 = memref.load %arg6[%c0_11] : memref<1xf32, #tpu.memory_space<smem>>
    %19 = vector.broadcast %18 : f32 to vector<2x16xf32>
    %20 = arith.addf %17, %19 : vector<2x16xf32>
    %cst_12 = arith.constant dense<0xFF800000> : vector<2xf32>
    %21 = vector.multi_reduction <maximumf>, %20, %cst_12 [1] : vector<2x16xf32> to vector<2xf32>
    %22 = vector.shape_cast %21 : vector<2xf32> to vector<2x1xf32>
    %23 = vector.broadcast %22 : vector<2x1xf32> to vector<2x16xf32>
    %24 = arith.subf %20, %23 : vector<2x16xf32>
    %25 = math.exp %24 : vector<2x16xf32>
    %cst_13 = arith.constant dense<0.000000e+00> : vector<2xf32>
    %26 = vector.multi_reduction <add>, %25, %cst_13 [1] : vector<2x16xf32> to vector<2xf32>
    %27 = vector.shape_cast %26 : vector<2xf32> to vector<2x1xf32>
    %28 = tpu.reciprocal %27 : vector<2x1xf32> -> vector<2x1xf32>
    %29 = vector.broadcast %28 : vector<2x1xf32> to vector<2x16xf32>
    %30 = arith.mulf %25, %29 : vector<2x16xf32>
    %31 = vector.shape_cast %30 : vector<2x16xf32> to vector<2x1x16xf32>
    "tpu.trace_start"() <{level = 10 : i32, message = "bqp,bpe->bqe"}> : () -> ()
    %cst_14 = arith.constant dense<0.000000e+00> : vector<2x1x128xf32>
    %32 = tpu.matmul %31, %0, %cst_14 {dimension_numbers = #tpu.dot_dimension_numbers<[2], [1], [1], [2], [0, 0, 0, 1, 1, 2], [0], [0]>} : vector<2x1x16xf32>, vector<2x16x128xf32>, vector<2x1x128xf32> -> vector<2x1x128xf32>
    "tpu.trace_stop"() : () -> ()
    %33 = vector.shape_cast %32 : vector<2x1x128xf32> to vector<2x128xf32>
    %c0_15 = arith.constant 0 : index
    %c0_16 = arith.constant 0 : index
    %34 = vector.load %arg7[%c0_15, %c0_16] : memref<2x128xf32, #tpu.memory_space<vmem>>, vector<2x128xf32>
    tpu.vector_store %arg7[%c0_15, %c0_16], %33 {strides = array<i32>} : memref<2x128xf32, #tpu.memory_space<vmem>>, vector<2x128xf32>,
    %c0_17 = arith.constant 0 : index
    %c0_18 = arith.constant 0 : index
    %35 = vector.load %arg8[%c0_17, %c0_18] : memref<2x16xf32, #tpu.memory_space<vmem>>, vector<2x16xf32>
    tpu.vector_store %arg8[%c0_17, %c0_18], %30 {strides = array<i32>} : memref<2x16xf32, #tpu.memory_space<vmem>>, vector<2x16xf32>,
    return
  }
  func.func @transform_0(%arg0: i32) -> (i32, i32, i32) {
    %c0_i32 = arith.constant 0 : i32
    %c0_i32_0 = arith.constant 0 : i32
    %c0_i32_1 = arith.constant 0 : i32
    return %arg0, %c0_i32, %c0_i32_0 : i32, i32, i32
  }
  func.func @transform_1(%arg0: i32) -> (i32, i32) {
    %c0_i32 = arith.constant 0 : i32
    %c0_i32_0 = arith.constant 0 : i32
    return %arg0, %c0_i32 : i32, i32
  }
  func.func @transform_2(%arg0: i32) -> (i32, i32) {
    %c0_i32 = arith.constant 0 : i32
    %c0_i32_0 = arith.constant 0 : i32
    %c0_i32_1 = arith.constant 0 : i32
    return %c0_i32, %c0_i32_0 : i32, i32
  }
  func.func @transform_3(%arg0: i32) -> (i32, i32) {
    %c0_i32 = arith.constant 0 : i32
    %c0_i32_0 = arith.constant 0 : i32
    %c0_i32_1 = arith.constant 0 : i32
    return %c0_i32, %c0_i32_0 : i32, i32
  }
  func.func @transform_4(%arg0: i32) -> (i32, i32) {
    %c0_i32 = arith.constant 0 : i32
    %c0_i32_0 = arith.constant 0 : i32
    %c0_i32_1 = arith.constant 0 : i32
    return %c0_i32, %c0_i32_0 : i32, i32
  }
  func.func @transform_5(%arg0: i32) -> i32 {
    %c0_i32 = arith.constant 0 : i32
    %c0_i32_0 = arith.constant 0 : i32
    return %c0_i32 : i32
  }
  func.func @transform_6(%arg0: i32) -> (i32, i32) {
    %c0_i32 = arith.constant 0 : i32
    %c0_i32_0 = arith.constant 0 : i32
    return %arg0, %c0_i32 : i32, i32
  }
  func.func @transform_7(%arg0: i32) -> (i32, i32) {
    %c0_i32 = arith.constant 0 : i32
    %c0_i32_0 = arith.constant 0 : i32
    return %arg0, %c0_i32 : i32, i32
  }
}

</mosaic_0001>

<bundles_post_ra>
// kernel: tpu_custom_call.1
= control target key start
LH: loop header
LB: loop body
LE: loop exit
PB: predicated region body
PF: predicated region fallthrough
CT: control target
= control target key end

     0   :  { %14 = vsyncpa [#allocation4], 0  ;;  %s969_s0 = inlined_call_operand.hbm [shape: f32[2,16,128], index: 0, kind: input, shape index: {}]   ;;  %s970_s1 = inlined_call_operand.hbm [shape: f32[2,512], index: 1, kind: input, shape index: {}]   ;;  %s971_s2 = inlined_call_operand.hbm [shape: f32[128,512], index: 2, kind: input, shape index: {}]   ;;  %s972_s3 = inlined_call_operand.vmem [shape: f32[1,512], index: 3, kind: input, shape index: {}]   ;;  %s973_s4 = inlined_call_operand.hbm [shape: f32[1,512], index: 4, kind: input, shape index: {}]   ;;  %s974_s5 = inlined_call_operand.<no memory space> [shape: f32[1], index: 5, kind: input, shape index: {}]   ;;  %s975_s6 = inlined_call_operand.hbm [shape: f32[2,128], index: 6, kind: output, shape index: {0}]   ;;  %s976_s7 = inlined_call_operand.hbm [shape: f32[2,16], index: 7, kind: output, shape index: {1}]  }
   0x1   :  { %15 = vsyncpa [#allocation7], 0 }
   0x2   :  { %16 = vsyncpa [#allocation10], 0 }
   0x3   :  { %17 = vsyncpa [#allocation5], 0  ;;  %s37_s26 = sshll.u32 %s970_s1, 4  ;;  %s38_s26 = int_to_ptr.hbm [resolvable:$true] %s37_s26 }
   0x4   :  { %18 = vsyncpa [#allocation13], 0  ;;  %s809_s27 = smov [#allocation6]   ;;  %s23_s8 = sshll.u32 %s969_s0, 4  ;;  %s24_s8 = int_to_ptr.hbm [resolvable:$true] %s23_s8 }
   0x5   :  { %s39_s28 = sshll.u32 %s809_s27, 4  ;;  %s810_s9 = smov [#allocation3]   ;;  %s40_s28 = int_to_ptr.vmem [resolvable:$true] %s39_s28 }
   0x6   :  { %42 = dma.hbm_to_vmem [thread:$0]  %s38_s26, 128, %s40_s28, [#allocation7]  }
   0x7   :  { %s25_s10 = sshll.u32 %s810_s9, 4  ;;  %s811_s11 = smov 128   ;;  %s26_s10 = int_to_ptr.vmem [resolvable:$true] %s25_s10 }
   0x8   :  { %s812_s12 = smov 8   ;;  %s47_s1 = sshll.u32 %s971_s2, 4  ;;  %s48_s1 = int_to_ptr.hbm [resolvable:$true] %s47_s1 }
   0x9   :  { %31 = dma.hbm_to_vmem [thread:$0]  %s24_s8, 512, %s26_s10, [#allocation4], %s811_s11, %s811_s11, %s812_s12  }
   0xa   :  { %s813_s15 = smov [#allocation8]   ;;  %s63_s0 = sshll.u32 %s973_s4, 4  ;;  %s64_s0 = int_to_ptr.hbm [resolvable:$true] %s63_s0 }
   0xb   :  { %s49_s16 = sshll.u32 %s813_s15, 4  ;;  %s814_s19 = smov 512   ;;  %s50_s16 = int_to_ptr.vmem [resolvable:$true] %s49_s16 }
   0xc   :  { %s815_s20 = smov 32   ;;  %s816_s21 = smov [#allocation9]  }
   0xd   :  { %55 = dma.hbm_to_vmem [thread:$0]  %s48_s1, 8192, %s50_s16, [#allocation7], %s814_s19, %s814_s19, %s815_s20  }
   0xe   :  { %s65_s22 = sshll.u32 %s816_s21, 4  ;;  %s66_s22 = int_to_ptr.vmem [resolvable:$true] %s65_s22 }
   0xf   :  { %68 = dma.hbm_to_vmem [thread:$0]  %s64_s0, 64, %s66_s22, [#allocation10]  }
  0x10   :  { %799 = dma.done.wait [#allocation4], 512  }
  0x11   :  { %800 = vsyncadd [#allocation4], 4294966784 }
  0x12   :  { %801 = dma.done.wait [#allocation7], 8320  }
  0x13   :  { %802 = vsyncadd [#allocation7], 4294958976 }
  0x14   :  { %803 = dma.done.wait [#allocation10], 64  }
  0x15   :  { %804 = vsyncadd [#allocation10], 4294967232  ;;  %v153_v0 = vld [vmem:[#allocation8 + $0x1f0] sm:$0xff]  ;;  %v154_v2 = vld [vmem:[#allocation8 + $0x1f8] sm:$0xff]  ;;  %vm286_vm0 = vcmask 1040384   ;;  %vm288_vm1 = vcmask 1042434  }
  0x16   :  { %v149_v1 = vld [vmem:[#allocation8 + $0x1d0] sm:$0xff]  ;;  %223 = vmatpush.msra.mxu2 %v153_v0  ;;  %252 = vmatpush.msra.mxu3 %v154_v2  ;;  %v151_v3 = vld [vmem:[#allocation8 + $0x1e0] sm:$0xff]  ;;  %v152_v4 = vld [vmem:[#allocation8 + $0x1e8] sm:$0xff]  ;;  %vm290_vm2 = vcmask 1041408   ;;  %vm292_vm3 = vcmask 1041409   ;;  %vm294_vm4 = vcmask 1043459  }
  0x17   :  { %v145_v5 = vld [vmem:[#allocation8 + $0x1b0] sm:$0xff]  ;;  %165 = vmatpush.msra.mxu0 %v151_v3  ;;  %194 = vmatpush.msra.mxu1 %v152_v4  ;;  %v150_v6 = vld [vmem:[#allocation8 + $0x1d8] sm:$0xff]  ;;  %v147_v7 = vld [vmem:[#allocation8 + $0x1c0] sm:$0xff]  ;;  %vm296_vm5 = vcmask 1042433   ;;  %vm408_vm6 = vcmask 130112   ;;  %vm415_vm7 = vcmask 123904  }
  0x18   :  { %v148_v8 = vld [vmem:[#allocation8 + $0x1c8] sm:$0xff]  ;;  %224 = vmatpush.msra.mxu2 %v149_v1  ;;  %253 = vmatpush.msra.mxu3 %v150_v6  ;;  %v146_v9 = vld [vmem:[#allocation8 + $0x1b8] sm:$0xff]  ;;  %v143_v10 = vld [vmem:[#allocation8 + $0x1a0] sm:$0xff]  ;;  %vm497_vm12 = vcmask 130048   ;;  %s580_s27 = sshll.u32 %s976_s7, 4  ;;  %s819_s28 = smov [#allocation11]   ;;  %s581_s27 = int_to_ptr.hbm [resolvable:$true] %s580_s27 }
  0x19   :  { %166 = vmatpush.msra.mxu0 %v147_v7  ;;  %195 = vmatpush.msra.mxu1 %v148_v8  ;;  %v141_v11 = vld [vmem:[#allocation8 + $0x190] sm:$0xff]  ;;  %v144_v12 = vld [vmem:[#allocation8 + $0x1a8] sm:$0xff]  ;;  %v142_v13 = vld [vmem:[#allocation8 + $0x198] sm:$0xff]  ;;  %s567_s29 = sshll.u32 %s819_s28, 4  ;;  %s569_s9 = sshll.u32 %s975_s6, 4  ;;  %s568_s29 = int_to_ptr.vmem [resolvable:$true] %s567_s29  ;;  %s570_s9 = int_to_ptr.hbm [resolvable:$true] %s569_s9 }
  0x1a   :  { %225 = vmatpush.msra.mxu2 %v145_v5  ;;  %254 = vmatpush.msra.mxu3 %v146_v9  ;;  %v139_v14 = vld [vmem:[#allocation8 + $0x180] sm:$0xff]  ;;  %v140_v15 = vld [vmem:[#allocation8 + $0x188] sm:$0xff]  ;;  %v137_v16 = vld [vmem:[#allocation8 + $0x170] sm:$0xff] }
  0x1b   :  { %167 = vmatpush.msra.mxu0 %v143_v10  ;;  %196 = vmatpush.msra.mxu1 %v144_v12  ;;  %v138_v17 = vld [vmem:[#allocation8 + $0x178] sm:$0xff]  ;;  %v135_v18 = vld [vmem:[#allocation8 + $0x160] sm:$0xff]  ;;  %v136_v19 = vld [vmem:[#allocation8 + $0x168] sm:$0xff] }
  0x1c   :  { %226 = vmatpush.msra.mxu2 %v141_v11  ;;  %255 = vmatpush.msra.mxu3 %v142_v13  ;;  %v133_v20 = vld [vmem:[#allocation8 + $0x150] sm:$0xff]  ;;  %v134_v21 = vld [vmem:[#allocation8 + $0x158] sm:$0xff]  ;;  %v131_v22 = vld [vmem:[#allocation8 + $0x140] sm:$0xff] }
  0x1d   :  { %168 = vmatpush.msra.mxu0 %v139_v14  ;;  %197 = vmatpush.msra.mxu1 %v140_v15  ;;  %v132_v23 = vld [vmem:[#allocation8 + $0x148] sm:$0xff]  ;;  %v129_v24 = vld [vmem:[#allocation8 + $0x130] sm:$0xff]  ;;  %v130_v25 = vld [vmem:[#allocation8 + $0x138] sm:$0xff] }
  0x1e   :  { %227 = vmatpush.msra.mxu2 %v137_v16  ;;  %256 = vmatpush.msra.mxu3 %v138_v17  ;;  %v127_v26 = vld [vmem:[#allocation8 + $0x120] sm:$0xff]  ;;  %v128_v27 = vld [vmem:[#allocation8 + $0x128] sm:$0xff]  ;;  %v125_v28 = vld [vmem:[#allocation8 + $0x110] sm:$0xff] }
  0x1f   :  { %169 = vmatpush.msra.mxu0 %v135_v18  ;;  %198 = vmatpush.msra.mxu1 %v136_v19  ;;  %v126_v29 = vld [vmem:[#allocation8 + $0x118] sm:$0xff]  ;;  %v123_v30 = vld [vmem:[#allocation8 + $0x100] sm:$0xff]  ;;  %v124_v31 = vld [vmem:[#allocation8 + $0x108] sm:$0xff] }
  0x20   :  { %228 = vmatpush.msra.mxu2 %v133_v20  ;;  %257 = vmatpush.msra.mxu3 %v134_v21  ;;  %v121_v32 = vld [vmem:[#allocation8 + $0xf0] sm:$0xff]  ;;  %v122_v33 = vld [vmem:[#allocation8 + $0xf8] sm:$0xff]  ;;  %v119_v34 = vld [vmem:[#allocation8 + $0xe0] sm:$0xff] }
  0x21   :  { %170 = vmatpush.msra.mxu0 %v131_v22  ;;  %199 = vmatpush.msra.mxu1 %v132_v23  ;;  %v120_v35 = vld [vmem:[#allocation8 + $0xe8] sm:$0xff]  ;;  %v117_v36 = vld [vmem:[#allocation8 + $0xd0] sm:$0xff]  ;;  %v118_v37 = vld [vmem:[#allocation8 + $0xd8] sm:$0xff] }
  0x22   :  { %229 = vmatpush.msra.mxu2 %v129_v24  ;;  %258 = vmatpush.msra.mxu3 %v130_v25  ;;  %v115_v38 = vld [vmem:[#allocation8 + $0xc0] sm:$0xff]  ;;  %v116_v39 = vld [vmem:[#allocation8 + $0xc8] sm:$0xff]  ;;  %v113_v40 = vld [vmem:[#allocation8 + $0xb0] sm:$0xff] }
  0x23   :  { %171 = vmatpush.msra.mxu0 %v127_v26  ;;  %200 = vmatpush.msra.mxu1 %v128_v27  ;;  %v114_v41 = vld [vmem:[#allocation8 + $0xb8] sm:$0xff]  ;;  %v111_v42 = vld [vmem:[#allocation8 + $0xa0] sm:$0xff]  ;;  %v112_v43 = vld [vmem:[#allocation8 + $0xa8] sm:$0xff] }
  0x24   :  { %230 = vmatpush.msra.mxu2 %v125_v28  ;;  %259 = vmatpush.msra.mxu3 %v126_v29  ;;  %v109_v44 = vld [vmem:[#allocation8 + $0x90] sm:$0xff]  ;;  %v110_v45 = vld [vmem:[#allocation8 + $0x98] sm:$0xff]  ;;  %v107_v46 = vld [vmem:[#allocation8 + $0x80] sm:$0xff] }
  0x25   :  { %172 = vmatpush.msra.mxu0 %v123_v30  ;;  %201 = vmatpush.msra.mxu1 %v124_v31  ;;  %v108_v47 = vld [vmem:[#allocation8 + $0x88] sm:$0xff]  ;;  %v105_v48 = vld [vmem:[#allocation8 + $0x70] sm:$0xff]  ;;  %v106_v49 = vld [vmem:[#allocation8 + $0x78] sm:$0xff] }
  0x26   :  { %231 = vmatpush.msra.mxu2 %v121_v32  ;;  %260 = vmatpush.msra.mxu3 %v122_v33  ;;  %v103_v50 = vld [vmem:[#allocation8 + $0x60] sm:$0xff]  ;;  %v104_v51 = vld [vmem:[#allocation8 + $0x68] sm:$0xff]  ;;  %v101_v52 = vld [vmem:[#allocation8 + $0x50] sm:$0xff] }
  0x27   :  { %173 = vmatpush.msra.mxu0 %v119_v34  ;;  %202 = vmatpush.msra.mxu1 %v120_v35  ;;  %v102_v53 = vld [vmem:[#allocation8 + $0x58] sm:$0xff]  ;;  %v99_v54 = vld [vmem:[#allocation8 + $0x40] sm:$0xff]  ;;  %v100_v55 = vld [vmem:[#allocation8 + $0x48] sm:$0xff] }
  0x28   :  { %232 = vmatpush.msra.mxu2 %v117_v36  ;;  %261 = vmatpush.msra.mxu3 %v118_v37  ;;  %v97_v56 = vld [vmem:[#allocation8 + $0x30] sm:$0xff]  ;;  %v98_v57 = vld [vmem:[#allocation8 + $0x38] sm:$0xff]  ;;  %v95_v58 = vld [vmem:[#allocation8 + $0x20] sm:$0xff] }
  0x29   :  { %174 = vmatpush.msra.mxu0 %v115_v38  ;;  %203 = vmatpush.msra.mxu1 %v116_v39  ;;  %v96_v59 = vld [vmem:[#allocation8 + $0x28] sm:$0xff]  ;;  %v93_v60 = vld [vmem:[#allocation8 + $0x10] sm:$0xff]  ;;  %v94_v61 = vld [vmem:[#allocation8 + $0x18] sm:$0xff] }
  0x2a   :  { %233 = vmatpush.msra.mxu2 %v113_v40  ;;  %262 = vmatpush.msra.mxu3 %v114_v41  ;;  %v87_v62 = vld [vmem:[#allocation3] sm:$0xff]  ;;  %v91_v63 = vld [vmem:[#allocation8] sm:$0xff]  ;;  %v92_v0 = vld [vmem:[#allocation8 + $0x8] sm:$0xff] }
  0x2b   :  { %175 = vmatpush.msra.mxu0 %v111_v42  ;;  %204 = vmatpush.msra.mxu1 %v112_v43  ;;  %v88_v1 = vld [vmem:[#allocation3 + $0x8] sm:$0xff]  ;;  %v90_v2 = vld [vmem:[#allocation3 + $0x18] sm:$0xff]  ;;  %v89_v3 = vld [vmem:[#allocation3 + $0x10] sm:$0xff] }
  0x2c   :  { %234 = vmatpush.msra.mxu2 %v109_v44  ;;  %263 = vmatpush.msra.mxu3 %v110_v45  ;;  %v281_v4 = vld [vmem:[#allocation6] sm:$0xff]  ;;  %v347_v32 = vld [vmem:[#allocation9] sm:$0xf] }
  0x2d   :  { %176 = vmatpush.msra.mxu0 %v107_v46  ;;  %205 = vmatpush.msra.mxu1 %v108_v47  ;;  %v283_v5 = vrot.slane %v281_v4, 1  ;;  %v284_v6 = vrot.slane %v281_v4, 2  ;;  %v285_v7 = vrot.slane %v281_v4, 3  ;;  %v155_v10 = vld [vmem:[%s972_s3] sm:$0xf]  ;;  %v888_v38 = vperm.slane %v347_v32, 0 }
  0x2e   :  { %235 = vmatpush.msra.mxu2 %v105_v48  ;;  %264 = vmatpush.msra.mxu3 %v106_v49  ;;  %v875_v12 = vperm.slane %v155_v10, 0  ;;  %v877_v13 = vperm.slane %v155_v10, 1  ;;  %v879_v18 = vperm.slane %v155_v10, 2  ;;  %v881_v19 = vperm.slane %v155_v10, 3 }
  0x2f   :  { %177 = vmatpush.msra.mxu0 %v103_v50  ;;  %206 = vmatpush.msra.mxu1 %v104_v51  ;;  %v287_v8 = vsel %vm286_vm0, %v281_v4, %v283_v5  ;;  %v289_v9 = vsel %vm288_vm1, %v284_v6, %v285_v7  ;;  %v293_v28 = vsel %vm292_vm3, %v281_v4, %v283_v5  ;;  %v892_v41 = vperm.slane %v347_v32, 1 }
  0x30   :  { %236 = vmatpush.msra.mxu2 %v101_v52  ;;  %265 = vmatpush.msra.mxu3 %v102_v53  ;;  %v291_v11 = vsel %vm290_vm2, %v287_v8, %v289_v9  ;;  %v295_v29 = vsel %vm294_vm4, %v284_v6, %v285_v7  ;;  %v896_v49 = vperm.slane %v347_v32, 2  ;;  %v898_v50 = vperm.slane %v347_v32, 3 }
  0x31   :  { %178 = vmatpush.msra.mxu0 %v99_v54  ;;  %207 = vmatpush.msra.mxu1 %v100_v55  ;;  %v299_v14 = vperm.slane %v291_v11, 0  ;;  %v300_v15 = vperm.slane %v291_v11, 1  ;;  %v301_v24 = vperm.slane %v291_v11, 2  ;;  %v302_v25 = vperm.slane %v291_v11, 3 }
  0x32   :  { %237 = vmatpush.msra.mxu2 %v97_v56  ;;  %266 = vmatpush.msra.mxu3 %v98_v57  ;;  %v297_v35 = vsel %vm296_vm5, %v293_v28, %v295_v29 }
  0x33   :  { %179 = vmatpush.msra.mxu0 %v95_v58  ;;  %208 = vmatpush.msra.mxu1 %v96_v59  ;;  %v894_v42 = vrot.slane %v297_v35, 1 }
  0x34   :  { %238 = vmatpush.msra.mxu2 %v93_v60  ;;  %267 = vmatpush.msra.mxu3 %v94_v61 }
  0x35   :  { %239 = vmatmul.f32.vlgmr.msra.gmra.mxu2 %v87_v62  ;;  %268 = vmatmul.f32.vlgmr.msra.gmra.mxu3 %v87_v62  ;;  %v303_v55 = vperm.slane %v894_v42, 0  ;;  %v304_v59 = vperm.slane %v894_v42, 1  ;;  %v305_v8 = vperm.slane %v894_v42, 2  ;;  %v306_v9 = vperm.slane %v894_v42, 3 }
  0x36   :  { %180 = vmatpush.msra.mxu0 %v91_v63  ;;  %209 = vmatpush.msra.mxu1 %v92_v0 }
  0x37   :  { %181 = vmatmul.f32.vlgmr.msra.gmra.mxu0 %v87_v62  ;;  %210 = vmatmul.f32.vlgmr.msra.gmra.mxu1 %v87_v62 }
  0x38   :  { %547 = vmatpush.msrb.mxu1 %v90_v2  ;;  %514 = vmatpush.msrb.mxu0 %v88_v1 }
  0x3a   :  { %548 = vmatpush.msrb.mxu1 %v89_v3  ;;  %515 = vmatpush.msrb.mxu0 %v87_v62 }
  0x3d   :  { %242 = vmatmul.f32.gmra.mxu2 %v88_v1  ;;  %271 = vmatmul.f32.gmra.mxu3 %v88_v1 }
  0x3f   :  { %184 = vmatmul.f32.gmra.mxu0 %v88_v1  ;;  %213 = vmatmul.f32.gmra.mxu1 %v88_v1 }
  0x45   :  { %245 = vmatmul.f32.gmra.mxu2 %v89_v3  ;;  %274 = vmatmul.f32.gmra.mxu3 %v89_v3 }
  0x47   :  { %187 = vmatmul.f32.gmra.mxu0 %v89_v3  ;;  %216 = vmatmul.f32.gmra.mxu1 %v89_v3 }
  0x4d   :  { %248 = vmatmul.f32.gmra.mxu2 %v90_v2  ;;  %277 = vmatmul.f32.gmra.mxu3 %v90_v2 }
  0x4f   :  { %190 = vmatmul.f32.gmra.mxu0 %v90_v2  ;;  %219 = vmatmul.f32.gmra.mxu1 %v90_v2 }
  0xb4   :  { %v182_v16 = vpop.f32.mrf.mxu0  ;;  %v211_v17 = vpop.f32.mrf.mxu1 }
  0xb5   :  { %v183_v20 = vadd.f32 %v182_v16, %v875_v12  ;;  %v212_v21 = vadd.f32 %v211_v17, %v877_v13 }
  0xb7   :  { %v315_v22 = vadd.f32 %v299_v14, %v183_v20  ;;  %v316_v23 = vadd.f32 %v300_v15, %v212_v21 }
  0xb8   :  { %v240_v26 = vpop.f32.mrf.mxu2  ;;  %v269_v27 = vpop.f32.mrf.mxu3 }
  0xb9   :  { %613 = vtanh.f32 %v315_v22  ;;  %v241_v30 = vadd.f32 %v240_v26, %v879_v18  ;;  %v270_v31 = vadd.f32 %v269_v27, %v881_v19 }
  0xba   :  { %615 = vtanh.f32 %v316_v23 }
  0xbb   :  { %v317_v33 = vadd.f32 %v301_v24, %v241_v30  ;;  %v318_v34 = vadd.f32 %v302_v25, %v270_v31 }
  0xbc   :  { %v185_v36 = vpop.f32.mrf.mxu0  ;;  %v214_v37 = vpop.f32.mrf.mxu1 }
  0xbd   :  { %617 = vtanh.f32 %v317_v33  ;;  %v186_v39 = vadd.f32 %v185_v36, %v875_v12  ;;  %v215_v40 = vadd.f32 %v214_v37, %v877_v13 }
  0xbe   :  { %619 = vtanh.f32 %v318_v34 }
  0xbf   :  { %v614_v43 = vpop.eup %613  ;;  %v319_v44 = vadd.f32 %v299_v14, %v186_v39  ;;  %v320_v45 = vadd.f32 %v300_v15, %v215_v40 }
  0xc0   :  { %v616_v46 = vpop.eup %615  ;;  %v243_v47 = vpop.f32.mrf.mxu2  ;;  %v357_v51 = vmul.f32 %v614_v43, %v888_v38 }
  0xc1   :  { %v272_v48 = vpop.f32.mrf.mxu3  ;;  %621 = vtanh.f32 %v319_v44  ;;  %v244_v52 = vadd.f32 %v243_v47, %v879_v18  ;;  %v358_v54 = vmul.f32 %v616_v46, %v892_v41 }
  0xc2   :  { %v273_v53 = vadd.f32 %v272_v48, %v881_v19  ;;  %623 = vtanh.f32 %v320_v45 }
  0xc3   :  { %v618_v56 = vpop.eup %617  ;;  %v321_v57 = vadd.f32 %v301_v24, %v244_v52  ;;  %v373_v60 = vadd.f32 %v358_v54, %v357_v51 }
  0xc4   :  { %v322_v58 = vadd.f32 %v302_v25, %v273_v53  ;;  %v620_v61 = vpop.eup %619  ;;  %v188_v62 = vpop.f32.mrf.mxu0  ;;  %v359_v0 = vmul.f32 %v618_v56, %v896_v49 }
  0xc5   :  { %v217_v63 = vpop.f32.mrf.mxu1  ;;  %625 = vtanh.f32 %v321_v57  ;;  %v189_v1 = vadd.f32 %v188_v62, %v875_v12  ;;  %v360_v3 = vmul.f32 %v620_v61, %v898_v50 }
  0xc6   :  { %v218_v2 = vadd.f32 %v217_v63, %v877_v13  ;;  %627 = vtanh.f32 %v322_v58  ;;  %v374_v4 = vadd.f32 %v373_v60, %v359_v0 }
  0xc7   :  { %v622_v5 = vpop.eup %621  ;;  %v323_v6 = vadd.f32 %v303_v55, %v189_v1 }
  0xc8   :  { %v324_v7 = vadd.f32 %v304_v59, %v218_v2  ;;  %v624_v10 = vpop.eup %623  ;;  %v246_v11 = vpop.f32.mrf.mxu2  ;;  %v375_v15 = vadd.f32 %v374_v4, %v360_v3  ;;  %v361_v16 = vmul.f32 %v622_v5, %v888_v38  ;;  %v403_v2 = vlaneseq }
  0xc9   :  { %v275_v14 = vpop.f32.mrf.mxu3  ;;  %629 = vtanh.f32 %v323_v6  ;;  %v247_v17 = vadd.f32 %v246_v11, %v879_v18  ;;  %v362_v21 = vmul.f32 %v624_v10, %v892_v41 }
  0xca   :  { %v276_v20 = vadd.f32 %v275_v14, %v881_v19  ;;  %631 = vtanh.f32 %v324_v7  ;;  %376 = vadd.xlane.f32.xlu0 %v375_v15  ;;  %v930_v5 = vand.u32 127, %v403_v2 }
  0xcb   :  { %v626_v22 = vpop.eup %625  ;;  %v325_v23 = vadd.f32 %v305_v8, %v247_v17  ;;  %v378_v25 = vadd.f32 %v362_v21, %v361_v16  ;;  %v817_v21 = vmov 0  }
  0xcc   :  { %v326_v24 = vadd.f32 %v306_v9, %v276_v20  ;;  %v628_v26 = vpop.eup %627  ;;  %v191_v27 = vpop.f32.mrf.mxu0  ;;  %v363_v29 = vmul.f32 %v626_v22, %v896_v49  ;;  %612 = vset.pattern.permute.xlu1 %v817_v21  ;;  %611 = vset.pattern.permute.xlu0 %v817_v21 }
  0xcd   :  { %v220_v28 = vpop.f32.mrf.mxu1  ;;  %633 = vtanh.f32 %v325_v23  ;;  %v192_v30 = vadd.f32 %v191_v27, %v875_v12  ;;  %v364_v32 = vmul.f32 %v628_v26, %v898_v50  ;;  %610 = vset.pattern.permute.xlu2 %v817_v21 }
  0xce   :  { %v221_v31 = vadd.f32 %v220_v28, %v877_v13  ;;  %635 = vtanh.f32 %v326_v24  ;;  %v379_v33 = vadd.f32 %v378_v25, %v363_v29 }
  0xcf   :  { %v630_v34 = vpop.eup %629  ;;  %v327_v35 = vadd.f32 %v303_v55, %v192_v30 }
  0xd0   :  { %v328_v36 = vadd.f32 %v304_v59, %v221_v31  ;;  %v632_v37 = vpop.eup %631  ;;  %v249_v39 = vpop.f32.mrf.mxu2  ;;  %v380_v42 = vadd.f32 %v379_v33, %v364_v32  ;;  %v365_v43 = vmul.f32 %v630_v34, %v888_v38 }
  0xd1   :  { %v278_v40 = vpop.f32.mrf.mxu3  ;;  %637 = vtanh.f32 %v327_v35  ;;  %v250_v44 = vadd.f32 %v249_v39, %v879_v18  ;;  %v366_v13 = vmul.f32 %v632_v37, %v892_v41 }
  0xd2   :  { %v279_v12 = vadd.f32 %v278_v40, %v881_v19  ;;  %639 = vtanh.f32 %v328_v36  ;;  %381 = vadd.xlane.f32.xlu0 %v380_v42 }
  0xd3   :  { %v634_v45 = vpop.eup %633  ;;  %v329_v46 = vadd.f32 %v305_v8, %v250_v44  ;;  %v383_v48 = vadd.f32 %v366_v13, %v365_v43 }
  0xd4   :  { %v330_v47 = vadd.f32 %v306_v9, %v279_v12  ;;  %v636_v51 = vpop.eup %635  ;;  %v367_v52 = vmul.f32 %v634_v45, %v896_v49 }
  0xd5   :  { %641 = vtanh.f32 %v329_v46  ;;  %v368_v53 = vmul.f32 %v636_v51, %v898_v50 }
  0xd6   :  { %643 = vtanh.f32 %v330_v47  ;;  %v384_v54 = vadd.f32 %v383_v48, %v367_v52 }
  0xd7   :  { %v638_v55 = vpop.eup %637 }
  0xd8   :  { %v640_v18 = vpop.eup %639  ;;  %v385_v56 = vadd.f32 %v384_v54, %v368_v53  ;;  %v369_v19 = vmul.f32 %v638_v55, %v888_v38  ;;  %v394_v38 = vstv %s974_s5  ;;  %s818_s5 = smov [#allocation12]  }
  0xd9   :  { %v370_v57 = vmul.f32 %v640_v18, %v892_v41  ;;  %v936_v41 = vadd.s32 4294967288, %v930_v5  ;;  %s578_s24 = sshll.u32 %s818_s5, 4  ;;  %s579_s24 = int_to_ptr.vmem [resolvable:$true] %s578_s24 }
  0xda   :  { %386 = vadd.xlane.f32.xlu1 %v385_v56 }
  0xdb   :  { %v642_v58 = vpop.eup %641  ;;  %v388_v59 = vadd.f32 %v370_v57, %v369_v19 }
  0xdc   :  { %v644_v60 = vpop.eup %643  ;;  %v371_v61 = vmul.f32 %v642_v58, %v896_v49 }
  0xdd   :  { %v372_v62 = vmul.f32 %v644_v60, %v898_v50 }
  0xde   :  { %v389_v63 = vadd.f32 %v388_v59, %v371_v61 }
  0xe0   :  { %v390_v0 = vadd.f32 %v389_v63, %v372_v62 }
  0xe2   :  { %391 = vadd.xlane.f32.xlu1 %v390_v0 }
 0x13d   :  { %v377_v1 = vpop.xlane.xlu0 %376 }
 0x13e   :  { %v395_v49 = vadd.f32 %v394_v38, %v377_v1 }
 0x140   :  { %v405_v10 = vperm.slane %v395_v49, %v930_v5 }
 0x145   :  { %v382_v4 = vpop.xlane.xlu0 %381 }
 0x146   :  { %v396_v6 = vadd.f32 %v394_v38, %v382_v4 }
 0x148   :  { %v407_v8 = vperm.slane %v396_v6, %v936_v41 }
 0x14a   :  { %v409_v15 = vsel %vm408_vm6, %v407_v8, %v405_v10 }
 0x14d   :  { %v387_v3 = vpop.xlane.xlu1 %386 }
 0x14e   :  { %v397_v7 = vadd.f32 %v394_v38, %v387_v3 }
 0x150   :  { %v410_v11 = vperm.slane %v397_v7, %v930_v5 }
 0x155   :  { %v392_v50 = vpop.xlane.xlu1 %391 }
 0x156   :  { %v398_v9 = vadd.f32 %v394_v38, %v392_v50 }
 0x158   :  { %v411_v14 = vperm.slane %v398_v9, %v936_v41 }
 0x15a   :  { %v412_v16 = vsel %vm408_vm6, %v411_v14, %v410_v11 }
 0x15b   :  { %v413_v17 = vsel %vm292_vm3, %v412_v16, %v409_v15 }
 0x15c   :  { %v416_v20 = vsel %vm415_vm7, %v413_v17, -inf }
 0x15d   :  { %417 = vmax.xlane.f32.xlu2 %v416_v20 }
 0x1d0   :  { %v418_v22 = vpop.xlane.xlu2 %417 }
 0x1d1   :  { %v420_v23 = vperm.slane %v418_v22, 0  ;;  %v421_v24 = vperm.slane %v418_v22, 1 }
 0x1d3   :  { %v424_v25 = vsub.f32 %v395_v49, %v420_v23  ;;  %v425_v26 = vsub.f32 %v396_v6, %v420_v23  ;;  %v426_v27 = vsub.f32 %v397_v7, %v421_v24  ;;  %v427_v31 = vsub.f32 %v398_v9, %v421_v24 }
 0x1d5   :  { %v428_v28 = vmul.f32 1.442695, %v424_v25  ;;  %v430_v29 = vmul.f32 1.442695, %v425_v26  ;;  %v432_v30 = vmul.f32 1.442695, %v426_v27 }
 0x1d6   :  { %v434_v32 = vmul.f32 1.442695, %v427_v31 }
 0x1d7   :  { %645 = vpow2.f32 %v428_v28 }
 0x1d8   :  { %647 = vpow2.f32 %v430_v29 }
 0x1d9   :  { %649 = vpow2.f32 %v432_v30 }
 0x1da   :  { %651 = vpow2.f32 %v434_v32 }
 0x1dd   :  { %v646_v33 = vpop.eup %645 }
 0x1de   :  { %v648_v34 = vpop.eup %647  ;;  %441 = vperm.xlu2 %610, %v646_v33  }
 0x1df   :  { %v650_v35 = vpop.eup %649  ;;  %444 = vperm.xlu0 %611, %v648_v34  }
 0x1e0   :  { %447 = vperm.xlu1 %612, %v650_v35   ;;  %v652_v36 = vpop.eup %651 }
 0x1e6   :  { %450 = vperm.xlu2 %610, %v652_v36  }
 0x238   :  { %v442_v37 = vpop.permute.xlu2 %441 }
 0x239   :  { %v452_v42 = vperm.slane %v442_v37, %v930_v5 }
 0x240   :  { %v451_v39 = vpop.permute.xlu2 %450 }
 0x241   :  { %v456_v12 = vperm.slane %v451_v39, %v936_v41 }
 0x251   :  { %v445_v40 = vpop.permute.xlu0 %444 }
 0x252   :  { %v448_v43 = vpop.permute.xlu1 %447  ;;  %v453_v44 = vperm.slane %v445_v40, %v936_v41 }
 0x253   :  { %v455_v13 = vperm.slane %v448_v43, %v930_v5 }
 0x254   :  { %v454_v45 = vsel %vm408_vm6, %v453_v44, %v452_v42 }
 0x255   :  { %v457_v46 = vsel %vm408_vm6, %v456_v12, %v455_v13 }
 0x256   :  { %v458_v47 = vsel %vm292_vm3, %v457_v46, %v454_v45 }
 0x257   :  { %v460_v48 = vsel %vm415_vm7, %v458_v47, 0.0 }
 0x258   :  { %461 = vadd.xlane.f32.xlu2 %v460_v48 }
 0x2cb   :  { %v462_v51 = vpop.xlane.xlu2 %461 }
 0x2cc   :  { %653 = vrcp.f32 %v462_v51  ;;  %v474_v55 = vand.u32 2147483648, %v462_v51  ;;  %v472_v56 = vand.u32 2147483647, %v462_v51  ;;  %vm468_vm9 = vweird.f32 %v462_v51 }
 0x2ce   :  { %v475_v57 = vor.u32 1.1754944e-38, %v474_v55  ;;  %vm473_vm11 = vcmp.eq.f32.partialorder %v472_v56, 8.507059e+37 }
 0x2d2   :  { %v654_v52 = vpop.eup %653 }
 0x2d3   :  { %v464_v53 = vmul.f32 %v654_v52, %v462_v51  ;;  %vm469_vm8 = vweird.f32 %v654_v52 }
 0x2d4   :  { %vm470_vm10 = vmor %vm468_vm9, %vm469_vm8 }
 0x2d5   :  { %v465_v54 = vsub.f32 1.0, %v464_v53 }
 0x2d7   :  { %v466_v18 = vmul.f32 %v654_v52, %v465_v54 }
 0x2d9   :  { %v467_v19 = vadd.f32 %v654_v52, %v466_v18 }
 0x2db   :  { %v471_v58 = vsel %vm470_vm10, %v654_v52, %v467_v19 }
 0x2dc   :  { %v476_v59 = vsel %vm473_vm11, %v475_v57, %v471_v58 }
 0x2dd   :  { %v479_v60 = vperm.slane %v476_v59, 1  ;;  %v478_v61 = vperm.slane %v476_v59, 0 }
 0x2df   :  { %v484_v62 = vmul.f32 %v650_v35, %v479_v60  ;;  %v482_v63 = vmul.f32 %v646_v33, %v478_v61  ;;  %v485_v0 = vmul.f32 %v652_v36, %v479_v60  ;;  %v483_v1 = vmul.f32 %v648_v34, %v478_v61 }
 0x2e1   :  { %523 = vperm.xlu1 %612, %v484_v62   ;;  %489 = vperm.xlu0 %611, %v482_v63  }
 0x2e9   :  { %526 = vperm.xlu1 %612, %v485_v0  }
 0x2f1   :  { %492 = vperm.xlu1 %612, %v483_v1  }
 0x353   :  { %v524_v2 = vpop.permute.xlu1 %523  ;;  %v490_v49 = vpop.permute.xlu0 %489 }
 0x354   :  { %v528_v4 = vperm.slane %v524_v2, %v930_v5  ;;  %v494_v50 = vperm.slane %v490_v49, %v930_v5 }
 0x35b   :  { %v527_v3 = vpop.permute.xlu1 %526 }
 0x35c   :  { %v529_v38 = vperm.slane %v527_v3, %v936_v41 }
 0x35e   :  { %v530_v6 = vsel %vm408_vm6, %v529_v38, %v528_v4 }
 0x35f   :  { %598 = vmatmul.msk.f32.vlgmr.msrb.gmra.mxu1 %vm497_vm12, %v530_v6 }
 0x363   :  { %v493_v7 = vpop.permute.xlu1 %492 }
 0x364   :  { %v495_v8 = vperm.slane %v493_v7, %v936_v41 }
 0x366   :  { %v496_v9 = vsel %vm408_vm6, %v495_v8, %v494_v50 }
 0x367   :  { %597 = vmatmul.msk.f32.vlgmr.msrb.gmra.mxu0 %vm497_vm12, %v496_v9  ;;  %v559_v10 = vsel %vm292_vm3, %v530_v6, %v496_v9 }
 0x368   :  { %561 = vst.msk [vmem:[#allocation12] sm:$0x3] %vm415_vm7, %v559_v10 }
 0x369   :  { %583 = dma.vmem_to_hbm [thread:$0]  %s579_s24, 32, %s581_s27, [#allocation13]  }
 0x3dc   :  { %v550_v11 = vpop.f32.mrf.mxu1 }
 0x3dd   :  { %v555_v5 = vrot.slane %v550_v11, 7 }
 0x3e4   :  { %v517_v41 = vpop.f32.mrf.mxu0 }
 0x3e5   :  { %v556_v14 = vsel %vm292_vm3, %v555_v5, %v517_v41 }
 0x3e6   :  { %558 = vst [vmem:[#allocation11] sm:$0x3] %v556_v14 }
 0x3e7   :  { %572 = dma.vmem_to_hbm [thread:$0]  %s568_s29, 32, %s570_s9, [#allocation5]  }
 0x3e8   :  { %805 = dma.done.wait [#allocation5], 32  }
 0x3e9   :  { %806 = vsyncadd [#allocation5], 4294967264 }
 0x3ea   :  { %807 = dma.done.wait [#allocation13], 32  }
 0x3eb   :  { %808 = vsyncadd [#allocation13], 4294967264 }
 0x3ec   :  { %592 = vsyncpa [#allocation4], 1 }
 0x3ed   :  { %593 = vsyncpa [#allocation7], 1 }
 0x3ee   :  { %594 = vsyncpa [#allocation10], 1 }
 0x3ef   :  { %595 = vsyncpa [#allocation5], 1 }
 0x3f0   :  { %596 = vsyncpa [#allocation13], 1 }

</bundles_post_ra>
